<compile_context>
chip_gen: v7x
topology: tpu7x:2x2x1
jax: 0.10.0
libtpu: 0.0.40
codegen_flags: <defaults>
</compile_context>

<pallas_src>
import jax
import jax.numpy as jnp
from jax import lax
from jax.experimental import pallas as pl
from jax.experimental.pallas import tpu as pltpu


# Safe on v7x (64 MiB physical VMEM) while raising the 16/32 MiB scoped defaults.
_VMEM_LIMIT_BYTES = 48 * 1024 * 1024


def _pick_tile(dim, preferred, step):
    """Largest multiple of `step` that is <= `preferred` and divides `dim`.

    Falls back to the full dimension (a full-dim block always satisfies the
    Mosaic (8, 128) tiling rule, e.g. in_dim=784 which has no 128-multiple
    divisor).
    """
    t = min(preferred, dim)
    t = (t // step) * step
    while t >= step:
        if dim % t == 0:
            return t
        t -= step
    # TODO(synk): ragged-edge masking for huge dims with no aligned divisor;
    # full-dim fallback is correct but uses one large block.
    return dim


def _linear_mxu_kernel(x_ref, w_ref, o_ref, acc_ref):
    """General tiled matmul: x (tm, tk) x w (tn, tk) -> acc (tm, tn)."""
    k = pl.program_id(2)

    @pl.when(k == 0)
    def _():
        acc_ref[...] = jnp.zeros_like(acc_ref)

    # Contract the last axis of both operands (PyTorch weight layout kept as-is).
    acc_ref[...] += lax.dot_general(
        x_ref[...],
        w_ref[...],
        dimension_numbers=(((1,), (1,)), ((), ())),
        preferred_element_type=jnp.float32,
    )

    @pl.when(k == pl.num_programs(2) - 1)
    def _():
        o_ref[...] = acc_ref[...].astype(o_ref.dtype)


def _linear_matvec_kernel(x_ref, w_ref, o_ref, acc_ref):
    """out_dim == 1 path: VPU multiply + row reduction (skips the MXU)."""
    k = pl.program_id(1)

    @pl.when(k == 0)
    def _():
        acc_ref[...] = jnp.zeros_like(acc_ref)

    acc_ref[...] += jnp.sum(
        x_ref[...].astype(jnp.float32) * w_ref[...].astype(jnp.float32),
        axis=-1,
        keepdims=True,
    )

    @pl.when(k == pl.num_programs(1) - 1)
    def _():
        o_ref[...] = acc_ref[...].astype(o_ref.dtype)


def linear_forward(x, weight, *, compute_dtype=None, tm=256, tn=512, tk=512):
    """y = x @ weight.T ; weight is (out_dim, in_dim) (PyTorch nn.Linear layout)."""
    batch, in_dim = x.shape
    out_dim, in_dim_w = weight.shape
    assert in_dim == in_dim_w, "in_dim mismatch"
    out_dtype = x.dtype

    if compute_dtype is not None and x.dtype != compute_dtype:
        # e.g. bf16 operands for v6e/v7x MXU peak; accumulation stays f32.
        x = x.astype(compute_dtype)
        weight = weight.astype(compute_dtype)

    bm = _pick_tile(batch, tm, 8)
    bk = _pick_tile(in_dim, tk, 128)

    if out_dim == 1:
        # Mat-vec: grid over (M tiles, K tiles), K last (reduction).
        grid = (batch // bm, in_dim // bk)
        return pl.pallas_call(
            _linear_matvec_kernel,
            out_shape=jax.ShapeDtypeStruct((batch, 1), out_dtype),
            grid=grid,
            in_specs=[
                pl.BlockSpec((bm, bk), lambda i, k: (i, k)),
                pl.BlockSpec((1, bk), lambda i, k: (0, k)),
            ],
            out_specs=pl.BlockSpec((bm, 1), lambda i, k: (i, 0)),
            scratch_shapes=[pltpu.VMEM((bm, 1), jnp.float32)],
            compiler_params=pltpu.CompilerParams(
                dimension_semantics=("parallel", "arbitrary"),
                vmem_limit_bytes=_VMEM_LIMIT_BYTES,
            ),
        )(x, weight)

    bn = _pick_tile(out_dim, tn, 128)
    grid = (batch // bm, out_dim // bn, in_dim // bk)
    return pl.pallas_call(
        _linear_mxu_kernel,
        out_shape=jax.ShapeDtypeStruct((batch, out_dim), out_dtype),
        grid=grid,
        in_specs=[
            pl.BlockSpec((bm, bk), lambda i, j, k: (i, k)),
            pl.BlockSpec((bn, bk), lambda i, j, k: (j, k)),
        ],
        out_specs=pl.BlockSpec((bm, bn), lambda i, j, k: (i, j)),
        scratch_shapes=[pltpu.VMEM((bm, bn), jnp.float32)],
        compiler_params=pltpu.CompilerParams(
            dimension_semantics=("parallel", "parallel", "arbitrary"),
            vmem_limit_bytes=_VMEM_LIMIT_BYTES,
        ),
    )(x, weight)


if __name__ == "__main__":
    key = jax.random.PRNGKey(0)
    k1, k2, k3, k4, k5, k6 = jax.random.split(key, 6)

    # ---- Path 1: module defaults (in_dim=784, out_dim=1) -> VPU mat-vec path.
    in_dim, out_dim, batch = 28 * 28, 1, 8
    bound = 1.0 / jnp.sqrt(jnp.float32(in_dim))
    weight = jax.random.uniform(
        k1, (out_dim, in_dim), dtype=jnp.float32, minval=-bound, maxval=bound
    )
    x = jax.random.normal(k2, (batch, in_dim), dtype=jnp.float32)

    y = jax.block_until_ready(linear_forward(x, weight))
    y_ref = jnp.dot(x, weight.T, precision=lax.Precision.HIGHEST)
    assert y.shape == (batch, out_dim)
    assert jnp.allclose(y, y_ref, atol=1e-5, rtol=1e-5)

    # ---- Path 2: larger Linear -> tiled MXU path; small tiles force a
    #      multi-step grid (K accumulation across 4 steps, 2 N tiles).
    b2, i2, o2 = 64, 512, 256
    bound2 = 1.0 / jnp.sqrt(jnp.float32(i2))
    w2 = jax.random.uniform(k3, (o2, i2), dtype=jnp.float32, minval=-bound2, maxval=bound2)
    x2 = jax.random.normal(k4, (b2, i2), dtype=jnp.float32)

    y2 = jax.block_until_ready(linear_forward(x2, w2, tm=64, tn=128, tk=128))
    y2_ref = jnp.dot(x2, w2.T, precision=lax.Precision.HIGHEST)
    assert y2.shape == (b2, o2)
    assert jnp.allclose(y2, y2_ref, atol=1e-4, rtol=1e-4)

    # ---- Path 3: mat-vec path with K accumulation across multiple grid steps.
    b3, i3 = 16, 512
    bound3 = 1.0 / jnp.sqrt(jnp.float32(i3))
    w3 = jax.random.uniform(k5, (1, i3), dtype=jnp.float32, minval=-bound3, maxval=bound3)
    x3 = jax.random.normal(k6, (b3, i3), dtype=jnp.float32)

    y3 = jax.block_until_ready(linear_forward(x3, w3, tk=128))
    y3_ref = jnp.dot(x3, w3.T, precision=lax.Precision.HIGHEST)
    assert y3.shape == (b3, 1)
    assert jnp.allclose(y3, y3_ref, atol=1e-5, rtol=1e-5)

    print("KERNEL_OK")
</pallas_src>

<mosaic_0001>
module attributes {stable_mosaic.version = 11 : i64} {
  func.func @_linear_matvec_kernel(%arg0: i32, %arg1: i32, %arg2: memref<8x784xf32, #tpu.memory_space<vmem>>, %arg3: memref<1x784xf32, #tpu.memory_space<vmem>>, %arg4: memref<8x1xf32, #tpu.memory_space<vmem>>, %arg5: memref<8x1xf32, #tpu.memory_space<vmem>>) attributes {dimension_semantics = [#tpu.dimension_semantics<parallel>, #tpu.dimension_semantics<arbitrary>], iteration_bounds = array<i64: 1, 1>, scalar_prefetch = 0 : i64, scratch_operands = 1 : i64, tpu.core_type = #tpu.core_type<tc>, window_params = [{transform_indices = @transform_0, window_bounds = array<i64: 8, 784>}, {transform_indices = @transform_1, window_bounds = array<i64: 1, 784>}, {transform_indices = @transform_2, window_bounds = array<i64: 8, 1>}]} {
    %c0_i32 = arith.constant 0 : i32
    %0 = arith.cmpi eq, %arg1, %c0_i32 : i32
    %1 = arith.extui %0 : i1 to i32
    %c0_i32_0 = arith.constant 0 : i32
    %2 = arith.cmpi ne, %1, %c0_i32_0 : i32
    scf.if %2 {
      %cst_10 = arith.constant 0.000000e+00 : f32
      %15 = vector.broadcast %cst_10 : f32 to vector<8x1xf32>
      %c0_11 = arith.constant 0 : index
      %c0_12 = arith.constant 0 : index
      %16 = vector.load %arg5[%c0_11, %c0_12] : memref<8x1xf32, #tpu.memory_space<vmem>>, vector<8x1xf32>
      tpu.vector_store %arg5[%c0_11, %c0_12], %15 {strides = array<i32>} : memref<8x1xf32, #tpu.memory_space<vmem>>, vector<8x1xf32>,
    } else {
    }
    %c0 = arith.constant 0 : index
    %c0_1 = arith.constant 0 : index
    %3 = vector.load %arg5[%c0, %c0_1] : memref<8x1xf32, #tpu.memory_space<vmem>>, vector<8x1xf32>
    %c0_2 = arith.constant 0 : index
    %c0_3 = arith.constant 0 : index
    %4 = vector.load %arg2[%c0_2, %c0_3] : memref<8x784xf32, #tpu.memory_space<vmem>>, vector<8x784xf32>
    %c0_4 = arith.constant 0 : index
    %c0_5 = arith.constant 0 : index
    %5 = vector.load %arg3[%c0_4, %c0_5] : memref<1x784xf32, #tpu.memory_space<vmem>>, vector<1x784xf32>
    %6 = vector.broadcast %5 : vector<1x784xf32> to vector<8x784xf32>
    %7 = arith.mulf %4, %6 : vector<8x784xf32>
    %cst = arith.constant dense<0.000000e+00> : vector<8xf32>
    %8 = vector.multi_reduction <add>, %7, %cst [1] : vector<8x784xf32> to vector<8xf32>
    %9 = vector.shape_cast %8 : vector<8xf32> to vector<8x1xf32>
    %10 = arith.addf %3, %9 : vector<8x1xf32>
    %c0_6 = arith.constant 0 : index
    %c0_7 = arith.constant 0 : index
    %11 = vector.load %arg5[%c0_6, %c0_7] : memref<8x1xf32, #tpu.memory_space<vmem>>, vector<8x1xf32>
    tpu.vector_store %arg5[%c0_6, %c0_7], %10 {strides = array<i32>} : memref<8x1xf32, #tpu.memory_space<vmem>>, vector<8x1xf32>,
    %c0_i32_8 = arith.constant 0 : i32
    %12 = arith.cmpi eq, %arg1, %c0_i32_8 : i32
    %13 = arith.extui %12 : i1 to i32
    %c0_i32_9 = arith.constant 0 : i32
    %14 = arith.cmpi ne, %13, %c0_i32_9 : i32
    scf.if %14 {
      %c0_10 = arith.constant 0 : index
      %c0_11 = arith.constant 0 : index
      %15 = vector.load %arg5[%c0_10, %c0_11] : memref<8x1xf32, #tpu.memory_space<vmem>>, vector<8x1xf32>
      %c0_12 = arith.constant 0 : index
      %c0_13 = arith.constant 0 : index
      %16 = vector.load %arg4[%c0_12, %c0_13] : memref<8x1xf32, #tpu.memory_space<vmem>>, vector<8x1xf32>
      tpu.vector_store %arg4[%c0_12, %c0_13], %15 {strides = array<i32>} : memref<8x1xf32, #tpu.memory_space<vmem>>, vector<8x1xf32>,
    } else {
    }
    return
  }
  func.func @transform_0(%arg0: i32, %arg1: i32) -> (i32, i32) {
    %c0_i32 = arith.constant 0 : i32
    return %arg0, %arg1 : i32, i32
  }
  func.func @transform_1(%arg0: i32, %arg1: i32) -> (i32, i32) {
    %c0_i32 = arith.constant 0 : i32
    %c0_i32_0 = arith.constant 0 : i32
    return %c0_i32, %arg1 : i32, i32
  }
  func.func @transform_2(%arg0: i32, %arg1: i32) -> (i32, i32) {
    %c0_i32 = arith.constant 0 : i32
    %c0_i32_0 = arith.constant 0 : i32
    return %arg0, %c0_i32 : i32, i32
  }
}

</mosaic_0001>

<bundles_post_ra>
// kernel: tpu_custom_call.1
= control target key start
LH: loop header
LB: loop body
LE: loop exit
PB: predicated region body
PF: predicated region fallthrough
CT: control target
= control target key end

     0   :  { %7 = vsyncpa [#allocation4], 0  ;;  %s216_s0 = inlined_call_operand.hbm [shape: f32[8,784], index: 0, kind: input, shape index: {}]   ;;  %s217_s1 = inlined_call_operand.hbm [shape: f32[1,784], index: 1, kind: input, shape index: {}]   ;;  %s218_s2 = inlined_call_operand.vmem [shape: f32[8,1], index: 2, kind: output, shape index: {}]  }
   0x1   :  { %8 = vsyncpa [#allocation6], 0  ;;  %s168_s9 = smov [#allocation3]   ;;  %s169_s11 = smov [#allocation5]  }
   0x2   :  { %s15_s10 = sshll.u32 %s168_s9, 4  ;;  %s25_s12 = sshll.u32 %s169_s11, 4  ;;  %s16_s10 = int_to_ptr.vmem [resolvable:$true] %s15_s10  ;;  %s26_s12 = int_to_ptr.vmem [resolvable:$true] %s25_s12 }
   0x3   :  { %s120_s15 = scalar_lea.hbm %s216_s0, 896 }
   0x4   :  { %p121_p0 = scmp.ne.s32.totalorder %s216_s0, %s120_s15  ;;  %p124_p1 = scmp.lt.u32.totalorder %s120_s15, %s216_s0 }
   0x6   :  { %p126_p2 = pnand %p124_p1, %p121_p0 }
   0x8   :  { %129 = shalt.err (!%p126_p2)
}
   0x9   :  { %s130_s20 = scalar_lea.vmem %s16_s10, 896  ;;  %p135_p4 = scmp.lt.s32.totalorder %s16_s10, %s16_s10 }
   0xa   :  { %p131_p3 = scmp.ne.s32.totalorder %s16_s10, %s130_s20  ;;  %p136_p5 = scmp.lt.s32.totalorder %s130_s20, %s130_s20 }
   0xc   :  { %p137_p6 = por %p136_p5, %p135_p4 }
   0xe   :  { %p138_p7 = pnand %p137_p6, %p131_p3 }
  0x10   :  { %141 = shalt.err (!%p138_p7)
}
  0x11   :  { %18 = dma.hbm_to_vmem [thread:$0]  %s216_s0, 896, %s16_s10, [#allocation4]  }
  0x12   :  { %s142_s25 = scalar_lea.hbm %s217_s1, 112 }
  0x13   :  { %p143_p8 = scmp.ne.s32.totalorder %s217_s1, %s142_s25  ;;  %p146_p9 = scmp.lt.u32.totalorder %s142_s25, %s217_s1 }
  0x15   :  { %p148_p10 = pnand %p146_p9, %p143_p8 }
  0x17   :  { %151 = shalt.err (!%p148_p10)
}
  0x18   :  { %s152_s30 = scalar_lea.vmem %s26_s12, 112  ;;  %s156_s3 = scalar_lea.vmem %s26_s12, 128 }
  0x19   :  { %p153_p11 = scmp.ne.s32.totalorder %s26_s12, %s152_s30  ;;  %p157_p12 = scmp.lt.s32.totalorder %s26_s12, %s26_s12 }
  0x1a   :  { %p158_p13 = scmp.lt.s32.totalorder %s156_s3, %s152_s30 }
  0x1c   :  { %p159_p0 = por %p158_p13, %p157_p12 }
  0x1e   :  { %p160_p1 = pnand %p159_p0, %p153_p11 }
  0x20   :  { %163 = shalt.err (!%p160_p1)
}
  0x21   :  { %28 = dma.hbm_to_vmem [thread:$0]  %s217_s1, 112, %s26_s12, [#allocation6]  }
  0x22   :  { %164 = dma.done.wait [#allocation4], 896  }
  0x23   :  { %165 = vsyncadd [#allocation4], 4294966400 }
  0x24   :  { %166 = dma.done.wait [#allocation6], 112  }
  0x25   :  { %167 = vsyncadd [#allocation6], 4294967184  ;;  %v51_v0 = vlaneseq  ;;  %vm39_vm0 = vcmask 7168   ;;  %v170_v1 = vmov 0.0   ;;  %v42_v7 = vld [vmem:[#allocation3] sm:$0xff]  ;;  %v43_v9 = vld [vmem:[#allocation3 + $0x8] sm:$0xff] }
  0x26   :  { %40 = vst.msk [vmem:[#allocation2] sm:$0xff] %vm39_vm0, %v170_v1  ;;  %v44_v10 = vld [vmem:[#allocation3 + $0x10] sm:$0xff]  ;;  %v49_v11 = vld [vmem:[#allocation5] sm:$0x7f]  ;;  %v46_v23 = vld [vmem:[#allocation3 + $0x20] sm:$0xff]  ;;  %vm98_vm1 = vcmask 130048  }
  0x27   :  { %v52_v2 = vshrl.u32 %v51_v0, 7  ;;  %v45_v18 = vld [vmem:[#allocation3 + $0x18] sm:$0xff]  ;;  %v48_v25 = vld [vmem:[#allocation3 + $0x30] sm:$0xff]  ;;  %v47_v29 = vld [vmem:[#allocation3 + $0x28] sm:$0xff] }
  0x29   :  { %v53_v3 = vsub.s32 0, %v52_v2  ;;  %v57_v4 = vsub.s32 1, %v52_v2  ;;  %v61_v5 = vsub.s32 2, %v52_v2  ;;  %v65_v6 = vsub.s32 3, %v52_v2 }
  0x2a   :  { %v69_v8 = vsub.s32 4, %v52_v2  ;;  %v73_v12 = vsub.s32 5, %v52_v2  ;;  %v77_v13 = vsub.s32 6, %v52_v2 }
  0x2b   :  { %v54_v14 = vrot.slane %v49_v11, %v53_v3  ;;  %v58_v15 = vrot.slane %v49_v11, %v57_v4  ;;  %v62_v16 = vrot.slane %v49_v11, %v61_v5  ;;  %v66_v17 = vrot.slane %v49_v11, %v65_v6 }
  0x2c   :  { %v70_v19 = vrot.slane %v49_v11, %v69_v8  ;;  %v78_v24 = vrot.slane %v49_v11, %v77_v13  ;;  %v74_v26 = vrot.slane %v49_v11, %v73_v12 }
  0x2d   :  { %v86_v20 = vmul.f32 %v54_v14, %v42_v7  ;;  %v87_v21 = vmul.f32 %v58_v15, %v43_v9  ;;  %v88_v22 = vmul.f32 %v62_v16, %v44_v10  ;;  %v89_v27 = vmul.f32 %v66_v17, %v45_v18  ;;  %v41_v39 = vld [vmem:[#allocation2] sm:$0xff] }
  0x2e   :  { %v90_v30 = vmul.f32 %v70_v19, %v46_v23  ;;  %v92_v32 = vmul.f32 %v78_v24, %v48_v25  ;;  %v91_v33 = vmul.f32 %v74_v26, %v47_v29 }
  0x2f   :  { %v93_v28 = vadd.f32 %v87_v21, %v86_v20 }
  0x30   :  { %v99_v36 = vsel %vm98_vm1, %v92_v32, 0.0 }
  0x31   :  { %v94_v31 = vadd.f32 %v93_v28, %v88_v22 }
  0x33   :  { %v95_v34 = vadd.f32 %v94_v31, %v89_v27 }
  0x35   :  { %v96_v35 = vadd.f32 %v95_v34, %v90_v30 }
  0x37   :  { %v97_v37 = vadd.f32 %v96_v35, %v91_v33 }
  0x39   :  { %v100_v38 = vadd.f32 %v99_v36, %v97_v37 }
  0x3b   :  { %101 = vadd.xlane.f32.xlu0 %v100_v38 }
  0xc8   :  { %v102_v40 = vpop.xlane.xlu0 %101 }
  0xc9   :  { %v103_v41 = vadd.f32 %v102_v40, %v41_v39 }
  0xcb   :  { %105 = vst.msk [vmem:[#allocation2] sm:$0xff] %vm39_vm0, %v103_v41 }
  0xd2   :  { %v109_v42 = vld [vmem:[#allocation2] sm:$0xff] }
  0xd3   :  { %110 = vst.msk [vmem:[%s218_s2] sm:$0xff] %vm39_vm0, %v109_v42 }
  0xd4   :  { %115 = vsyncpa [#allocation4], 1 }
  0xd5   :  { %116 = vsyncpa [#allocation6], 1 }

</bundles_post_ra>
